<compile_context>
chip_gen: v5e
topology: v5e:2x2
jax: 0.10.0
libtpu: 0.0.40
codegen_flags: <defaults>
</compile_context>

<pallas_src>
import jax
import jax.numpy as jnp
from jax.experimental import pallas as pl
from jax.experimental.pallas import tpu as pltpu


def _classification_kernel(x_ref, w_ref, b_ref, o_ref):
    # x_ref: (TM, D) bf16, w_ref: (D, Np) bf16, b_ref: (1, Np) f32, o_ref: (TM, Np) f32
    logits = jnp.dot(x_ref[...], w_ref[...], preferred_element_type=jnp.float32)
    logits = logits + b_ref[...]
    o_ref[...] = jax.nn.sigmoid(logits).astype(o_ref.dtype)


def _round_up(v, m):
    return (v + m - 1) // m * m


def classification_forward(x, weight, bias, *, block_m=512):
    """Eval-mode forward of `classfication`: sigmoid(x @ W + b).

    x:      (B, avg_dim) f32
    weight: (avg_dim, distiller_num) f32   (transposed vs PyTorch's (out, in))
    bias:   (distiller_num,) f32
    """
    B, D = x.shape
    N = weight.shape[1]

    # Lane-dense output: pad N up to a multiple of 128 (avoids masked vst.msk stores).
    Np = _round_up(N, 128)
    # Batch tile: large enough to amortize per-grid-step overhead, never larger than
    # (sublane-aligned) B.  block_m=512 keeps VMEM usage small on all generations.
    TM = min(block_m, _round_up(B, 8))
    Bp = _round_up(B, TM)

    # Halve HBM bytes on the streamed operands; math stays f32 past the MXU.
    x_bf = x.astype(jnp.bfloat16)
    w_bf = weight.astype(jnp.bfloat16)
    if Bp != B:
        x_bf = jnp.pad(x_bf, ((0, Bp - B), (0, 0)))
    if Np != N:
        w_bf = jnp.pad(w_bf, ((0, 0), (0, Np - N)))
        bias = jnp.pad(bias, (0, Np - N))
    bias2d = bias.reshape(1, Np).astype(jnp.float32)

    grid_m = Bp // TM

    cost = pl.CostEstimate(
        flops=2 * Bp * D * Np,
        transcendentals=Bp * Np,
        bytes_accessed=(x_bf.size * 2) + (w_bf.size * 2) + (bias2d.size * 4) + (Bp * Np * 4),
    )

    out = pl.pallas_call(
        _classification_kernel,
        out_shape=jax.ShapeDtypeStruct((Bp, Np), jnp.float32),
        grid_spec=pltpu.PrefetchScalarGridSpec(
            num_scalar_prefetch=0,
            grid=(grid_m,),
            in_specs=[
                pl.BlockSpec((TM, D), lambda i: (i, 0)),   # x: streamed, double-buffered
                pl.BlockSpec((D, Np), lambda i: (0, 0)),   # W: VMEM-resident across tiles
                pl.BlockSpec((1, Np), lambda i: (0, 0)),   # b: VMEM-resident across tiles
            ],
            out_specs=pl.BlockSpec((TM, Np), lambda i: (i, 0)),
        ),
        compiler_params=pltpu.CompilerParams(
            dimension_semantics=("parallel",),  # v7x: shard batch tiles across both TCs
        ),
        cost_estimate=cost,
    )(x_bf, w_bf, bias2d)

    # Strip batch / lane padding.
    return out[:B, :N]


if __name__ == "__main__":
    # Small shapes consistent with the module; distiller_num deliberately NOT a
    # multiple of 128 to exercise the lane-padding path.
    B, avg_dim, distiller_num = 16, 256, 100

    key = jax.random.PRNGKey(0)
    kx, kw, kb = jax.random.split(key, 3)

    x = jax.random.normal(kx, (B, avg_dim), dtype=jnp.float32)
    # Mimic nn.Linear's uniform(-1/sqrt(in), 1/sqrt(in)) init.
    bound = 1.0 / (avg_dim ** 0.5)
    weight = jax.random.uniform(kw, (avg_dim, distiller_num),
                                minval=-bound, maxval=bound, dtype=jnp.float32)
    bias = jax.random.uniform(kb, (distiller_num,),
                              minval=-bound, maxval=bound, dtype=jnp.float32)

    out = jax.block_until_ready(classification_forward(x, weight, bias))

    # References (eval-mode dropout == identity).
    x_bf = x.astype(jnp.bfloat16).astype(jnp.float32)
    w_bf = weight.astype(jnp.bfloat16).astype(jnp.float32)
    ref_bf16 = jax.nn.sigmoid(x_bf @ w_bf + bias)   # matches kernel precision
    ref_f32 = jax.nn.sigmoid(x @ weight + bias)     # pure f32 math

    assert out.shape == (B, distiller_num)
    assert jnp.allclose(out, ref_bf16, atol=5e-3, rtol=5e-3), float(
        jnp.max(jnp.abs(out - ref_bf16)))
    assert jnp.allclose(out, ref_f32, atol=3e-2, rtol=3e-2), float(
        jnp.max(jnp.abs(out - ref_f32)))

    print("KERNEL_OK")
</pallas_src>

<mosaic_0001>
module attributes {stable_mosaic.version = 11 : i64} {
  func.func @_classification_kernel(%arg0: i32, %arg1: memref<16x256xbf16, #tpu.memory_space<vmem>>, %arg2: memref<256x128xbf16, #tpu.memory_space<vmem>>, %arg3: memref<1x128xf32, #tpu.memory_space<vmem>>, %arg4: memref<16x128xf32, #tpu.memory_space<vmem>>) attributes {dimension_semantics = [#tpu.dimension_semantics<parallel>], iteration_bounds = array<i64: 1>, scalar_prefetch = 0 : i64, scratch_operands = 0 : i64, tpu.core_type = #tpu.core_type<tc>, window_params = [{transform_indices = @transform_0, window_bounds = array<i64: 16, 256>}, {pipeline_mode = #tpu.pipeline_mode<synchronous>, transform_indices = @transform_1, window_bounds = array<i64: 256, 128>}, {pipeline_mode = #tpu.pipeline_mode<synchronous>, transform_indices = @transform_2, window_bounds = array<i64: 1, 128>}, {transform_indices = @transform_3, window_bounds = array<i64: 16, 128>}]} {
    %c0 = arith.constant 0 : index
    %c0_0 = arith.constant 0 : index
    %0 = vector.load %arg1[%c0, %c0_0] : memref<16x256xbf16, #tpu.memory_space<vmem>>, vector<16x256xbf16>
    %c0_1 = arith.constant 0 : index
    %c0_2 = arith.constant 0 : index
    %1 = vector.load %arg2[%c0_1, %c0_2] : memref<256x128xbf16, #tpu.memory_space<vmem>>, vector<256x128xbf16>
    %cst = arith.constant dense<0.000000e+00> : vector<16x128xf32>
    %2 = tpu.matmul %0, %1, %cst {dimension_numbers = #tpu.dot_dimension_numbers<[1], [0], [0], [1], [0, 0, 1, 1], [], []>} : vector<16x256xbf16>, vector<256x128xbf16>, vector<16x128xf32> -> vector<16x128xf32>
    %c0_3 = arith.constant 0 : index
    %c0_4 = arith.constant 0 : index
    %3 = vector.load %arg3[%c0_3, %c0_4] : memref<1x128xf32, #tpu.memory_space<vmem>>, vector<1x128xf32>
    %4 = vector.broadcast %3 : vector<1x128xf32> to vector<16x128xf32>
    %5 = arith.addf %2, %4 : vector<16x128xf32>
    %6 = arith.negf %5 : vector<16x128xf32>
    %7 = math.exp %6 : vector<16x128xf32>
    %cst_5 = arith.constant 1.000000e+00 : f32
    %8 = vector.broadcast %cst_5 : f32 to vector<16x128xf32>
    %9 = arith.addf %8, %7 : vector<16x128xf32>
    %10 = arith.divf %8, %9 : vector<16x128xf32>
    %c0_6 = arith.constant 0 : index
    %c0_7 = arith.constant 0 : index
    %11 = vector.load %arg4[%c0_6, %c0_7] : memref<16x128xf32, #tpu.memory_space<vmem>>, vector<16x128xf32>
    tpu.vector_store %arg4[%c0_6, %c0_7], %10 {strides = array<i32>} : memref<16x128xf32, #tpu.memory_space<vmem>>, vector<16x128xf32>,
    return
  }
  func.func @transform_0(%arg0: i32) -> (i32, i32) {
    %c0_i32 = arith.constant 0 : i32
    %c0_i32_0 = arith.constant 0 : i32
    return %arg0, %c0_i32 : i32, i32
  }
  func.func @transform_1(%arg0: i32) -> (i32, i32) {
    %c0_i32 = arith.constant 0 : i32
    %c0_i32_0 = arith.constant 0 : i32
    %c0_i32_1 = arith.constant 0 : i32
    return %c0_i32, %c0_i32_0 : i32, i32
  }
  func.func @transform_2(%arg0: i32) -> (i32, i32) {
    %c0_i32 = arith.constant 0 : i32
    %c0_i32_0 = arith.constant 0 : i32
    %c0_i32_1 = arith.constant 0 : i32
    return %c0_i32, %c0_i32_0 : i32, i32
  }
  func.func @transform_3(%arg0: i32) -> (i32, i32) {
    %c0_i32 = arith.constant 0 : i32
    %c0_i32_0 = arith.constant 0 : i32
    return %arg0, %c0_i32 : i32, i32
  }
}

</mosaic_0001>

<bundles_post_ra>
// kernel: tpu_custom_call.1
= control target key start
LH: loop header
LB: loop body
LE: loop exit
PB: predicated region body
PF: predicated region fallthrough
CT: control target
= control target key end

     0   :  { %8 = vsyncpa [#allocation3], 0  ;;  %s510_s0 = inlined_call_operand.hbm [shape: bf16[16,256], index: 0, kind: input, shape index: {}]   ;;  %s511_s1 = inlined_call_operand.hbm [shape: bf16[256,128], index: 1, kind: input, shape index: {}]   ;;  %s512_s2 = inlined_call_operand.vmem [shape: f32[1,128], index: 2, kind: input, shape index: {}]   ;;  %s513_s3 = inlined_call_operand.hbm [shape: f32[16,128], index: 3, kind: output, shape index: {}]  }
   0x1   :  { %9 = vsyncpa [#allocation6], 0 }
   0x2   :  { %10 = vsyncpa [#allocation4], 0  ;;  %s15_s14 = sshll.u32 %s510_s0, 4  ;;  %s465_s15 = smov [#allocation2]   ;;  %s16_s14 = int_to_ptr.hbm [resolvable:$true] %s15_s14 }
   0x3   :  { %s17_s16 = sshll.u32 %s465_s15, 4  ;;  %s28_s19 = sshll.u32 %s511_s1, 4  ;;  %s18_s16 = int_to_ptr.vmem [resolvable:$true] %s17_s16  ;;  %s29_s19 = int_to_ptr.hbm [resolvable:$true] %s28_s19 }
   0x4   :  { %s466_s20 = smov 128   ;;  %s467_s21 = smov 8  }
   0x5   :  { %23 = dma.hbm_to_vmem [thread:$0]  %s16_s14, 256, %s18_s16, [#allocation3], %s466_s20, %s466_s20, %s467_s21  }
   0x6   :  { %s468_s22 = smov [#allocation5]   ;;  %s469_s24 = smov 64  }
   0x7   :  { %s30_s23 = sshll.u32 %s468_s22, 4  ;;  %s470_s0 = smov 4   ;;  %s31_s23 = int_to_ptr.vmem [resolvable:$true] %s30_s23 }
   0x8   :  { %36 = dma.hbm_to_vmem [thread:$0]  %s29_s19, 2048, %s31_s23, [#allocation6], %s469_s24, %s469_s24, %s470_s0  }
   0x9   :  { %459 = dma.done.wait [#allocation3], 256  }
   0xa   :  { %460 = vsyncadd [#allocation3], 4294967040 }
   0xb   :  { %461 = dma.done.wait [#allocation6], 2048  }
   0xc   :  { %462 = vsyncadd [#allocation6], 4294965248  ;;  %v362_v0 = vld [vmem:[#allocation5 + $0x38] sm:$0xff]  ;;  %v361_v2 = vld [vmem:[#allocation5 + $0x30] sm:$0xff]  ;;  %s265_s29 = sshll.u32 %s513_s3, 4  ;;  %s266_s29 = int_to_ptr.hbm [resolvable:$true] %s265_s29 }
   0xd   :  { %v370_v1 = vld [vmem:[#allocation5 + $0x78] sm:$0xff]  ;;  %191 = vmatpush.bf16.msra.mxu0 %v362_v0  ;;  %v369_v3 = vld [vmem:[#allocation5 + $0x70] sm:$0xff]  ;;  %v360_v4 = vld [vmem:[#allocation5 + $0x28] sm:$0xff] }
   0xe   :  { %205 = vmatpush.bf16.msra.mxu1 %v370_v1  ;;  %v368_v5 = vld [vmem:[#allocation5 + $0x68] sm:$0xff]  ;;  %v359_v6 = vld [vmem:[#allocation5 + $0x20] sm:$0xff]  ;;  %v358_v8 = vld [vmem:[#allocation5 + $0x18] sm:$0xff] }
   0xf   :  { %v367_v7 = vld [vmem:[#allocation5 + $0x60] sm:$0xff]  ;;  %v366_v9 = vld [vmem:[#allocation5 + $0x58] sm:$0xff]  ;;  %v357_v10 = vld [vmem:[#allocation5 + $0x10] sm:$0xff] }
  0x10   :  { %v365_v11 = vld [vmem:[#allocation5 + $0x50] sm:$0xff]  ;;  %v356_v12 = vld [vmem:[#allocation5 + $0x8] sm:$0xff]  ;;  %v355_v14 = vld [vmem:[#allocation5] sm:$0xff] }
  0x11   :  { %192 = vmatpush.bf16.msra.mxu0 %v361_v2  ;;  %v364_v13 = vld [vmem:[#allocation5 + $0x48] sm:$0xff]  ;;  %v363_v15 = vld [vmem:[#allocation5 + $0x40] sm:$0xff]  ;;  %v281_v16 = vld [vmem:[#allocation2] sm:$0xf] }
  0x12   :  { %206 = vmatpush.bf16.msra.mxu1 %v369_v3  ;;  %v354_v17 = vld [vmem:[#allocation2 + $0x4] sm:$0xf0]  ;;  %v353_v18 = vld [vmem:[#allocation2 + $0x4] sm:$0xf]  ;;  %v283_v19 = vld [vmem:[#allocation2 + $0x8] sm:$0xf0] }
  0x13   :  { %v282_v20 = vor.u32 %v354_v17, %v281_v16  ;;  %v286_v21 = vor.u32 %v353_v18, %v283_v19  ;;  %v378_v22 = vld [vmem:[%s512_s2] ss:$0 sm:$0xff]  ;;  %s471_s2 = smov [#allocation7]  }
  0x14   :  { %s263_s26 = sshll.u32 %s471_s2, 4  ;;  %s264_s26 = int_to_ptr.vmem [resolvable:$true] %s263_s26 }
  0x15   :  { %193 = vmatpush.bf16.msra.mxu0 %v360_v4 }
  0x16   :  { %207 = vmatpush.bf16.msra.mxu1 %v368_v5 }
  0x19   :  { %194 = vmatpush.bf16.msra.mxu0 %v359_v6 }
  0x1a   :  { %208 = vmatpush.bf16.msra.mxu1 %v367_v7 }
  0x1d   :  { %195 = vmatpush.bf16.msra.mxu0 %v358_v8 }
  0x1e   :  { %209 = vmatpush.bf16.msra.mxu1 %v366_v9 }
  0x21   :  { %196 = vmatpush.bf16.msra.mxu0 %v357_v10 }
  0x22   :  { %210 = vmatpush.bf16.msra.mxu1 %v365_v11 }
  0x25   :  { %197 = vmatpush.bf16.msra.mxu0 %v356_v12 }
  0x26   :  { %211 = vmatpush.bf16.msra.mxu1 %v364_v13 }
  0x29   :  { %198 = vmatpush.bf16.msra.mxu0 %v355_v14 }
  0x2a   :  { %212 = vmatpush.bf16.msra.mxu1 %v363_v15 }
  0x2c   :  { %199 = vmatmul.bf16.vlgmr.msra.gmra.mxu0 %v282_v20 }
  0x2d   :  { %213 = vmatmul.bf16.vlgmr.msra.gmra.mxu1 %v286_v21 }
  0xa9   :  { %v200_v23 = vpop.f32.mrf.mxu0 }
  0xaa   :  { %v214_v24 = vpop.f32.mrf.mxu1  ;;  %v201_v25 = vadd.f32 %v378_v22, %v200_v23 }
  0xac   :  { %v215_v26 = vadd.f32 %v214_v24, %v201_v25 }
  0xae   :  { %v351_v27 = vmul.f32 -1.442695, %v215_v26 }
  0xb0   :  { %379 = vpow2.f32 %v351_v27 }
  0xb1   :  { %v202_v28 = vpop.f32.mrf.mxu0 }
  0xb2   :  { %v203_v29 = vadd.f32 %v378_v22, %v202_v28  ;;  %v216_v30 = vpop.f32.mrf.mxu1 }
  0xb4   :  { %v217_v31 = vadd.f32 %v216_v30, %v203_v29 }
  0xb6   :  { %v380_v32 = vpop.eup %379  ;;  %v352_v33 = vmul.f32 -1.442695, %v217_v31 }
  0xb7   :  { %v225_v34 = vadd.f32 1.0, %v380_v32 }
  0xb8   :  { %381 = vpow2.f32 %v352_v33 }
  0xb9   :  { %383 = vrcp.f32 %v225_v34  ;;  %v238_v40 = vand.u32 2147483648, %v225_v34  ;;  %v236_v42 = vand.u32 2147483647, %v225_v34  ;;  %vm232_vm1 = vweird.f32 %v225_v34 }
  0xbb   :  { %v239_v45 = vor.u32 1.1754944e-38, %v238_v40  ;;  %vm237_vm3 = vcmp.eq.f32.partialorder %v236_v42, 8.507059e+37 }
  0xbe   :  { %v382_v35 = vpop.eup %381 }
  0xbf   :  { %v384_v36 = vpop.eup %383  ;;  %v226_v37 = vadd.f32 1.0, %v382_v35 }
  0xc0   :  { %v228_v38 = vmul.f32 %v384_v36, %v225_v34  ;;  %vm233_vm0 = vweird.f32 %v384_v36 }
  0xc1   :  { %385 = vrcp.f32 %v226_v37  ;;  %vm234_vm2 = vmor %vm232_vm1, %vm233_vm0  ;;  %v253_v50 = vand.u32 2147483648, %v226_v37  ;;  %v251_v52 = vand.u32 2147483647, %v226_v37  ;;  %vm247_vm5 = vweird.f32 %v226_v37 }
  0xc2   :  { %v229_v39 = vsub.f32 1.0, %v228_v38 }
  0xc3   :  { %v254_v54 = vor.u32 1.1754944e-38, %v253_v50  ;;  %vm252_vm7 = vcmp.eq.f32.partialorder %v251_v52, 8.507059e+37 }
  0xc4   :  { %v230_v41 = vmul.f32 %v384_v36, %v229_v39 }
  0xc6   :  { %v231_v43 = vadd.f32 %v384_v36, %v230_v41 }
  0xc7   :  { %v386_v44 = vpop.eup %385 }
  0xc8   :  { %v243_v46 = vmul.f32 %v386_v44, %v226_v37  ;;  %v235_v47 = vsel %vm234_vm2, %v384_v36, %v231_v43  ;;  %vm248_vm4 = vweird.f32 %v386_v44 }
  0xc9   :  { %v240_v48 = vsel %vm237_vm3, %v239_v45, %v235_v47  ;;  %vm249_vm6 = vmor %vm247_vm5, %vm248_vm4 }
  0xca   :  { %v244_v49 = vsub.f32 1.0, %v243_v46  ;;  %257 = vst [vmem:[#allocation7] sm:$0xff] %v240_v48 }
  0xcc   :  { %v245_v51 = vmul.f32 %v386_v44, %v244_v49 }
  0xce   :  { %v246_v53 = vadd.f32 %v386_v44, %v245_v51 }
  0xd0   :  { %v250_v55 = vsel %vm249_vm6, %v386_v44, %v246_v53 }
  0xd1   :  { %v255_v56 = vsel %vm252_vm7, %v254_v54, %v250_v55 }
  0xd2   :  { %258 = vst [vmem:[#allocation7 + $0x8] sm:$0xff] %v255_v56 }
  0xd3   :  { %271 = dma.vmem_to_hbm [thread:$0]  %s264_s26, 256, %s266_s29, [#allocation4], %s466_s20, %s466_s20, %s467_s21  }
  0xd4   :  { %463 = dma.done.wait [#allocation4], 256  }
  0xd5   :  { %464 = vsyncadd [#allocation4], 4294967040 }
  0xd6   :  { %276 = vsyncpa [#allocation3], 1 }
  0xd7   :  { %277 = vsyncpa [#allocation6], 1 }
  0xd8   :  { %278 = vsyncpa [#allocation4], 1 }

</bundles_post_ra>
